<compile_context>
chip_gen: v5e
topology: v5e:2x2
jax: 0.10.0
libtpu: 0.0.40
codegen_flags: <defaults>
</compile_context>

<pallas_src>
import functools
import math

import jax
import jax.numpy as jnp
from jax.experimental import pallas as pl
from jax.experimental.pallas import tpu as pltpu


def _cdiv(a, b):
    return -(-a // b)


def _round_up(a, b):
    return _cdiv(a, b) * b


# ------------------------------------------------------------ chip settings --

def _chip_kind():
    """Coarse TPU-generation classification from device_kind."""
    try:
        kind = jax.devices()[0].device_kind.lower()
    except Exception:
        return "unknown"
    if "v5 lite" in kind or "v5lite" in kind or "v5e" in kind:
        return "v5e"
    if "v6" in kind:
        return "v6e"
    if "v7" in kind or "tpu7" in kind or "7x" in kind:
        return "v7x"
    return "unknown"


def _default_budgets(chip):
    """(target_tile_bytes, vmem_limit_bytes).

    Sized so double-buffered in+out tiles (4 x tile) stay well inside the
    scoped limit, which itself stays well under physical VMEM (v7x: 64 MiB/TC).
    """
    if chip == "v7x":
        return 8 * 1024 * 1024, 44 * 1024 * 1024
    if chip == "v6e":
        return 8 * 1024 * 1024, 48 * 1024 * 1024
    if chip == "v5e":
        return 4 * 1024 * 1024, 32 * 1024 * 1024
    return 4 * 1024 * 1024, 32 * 1024 * 1024


# ---------------------------------------------------------------- kernels ----

def _dyt_affine_kernel(alpha_ref, x_ref, w_ref, b_ref, o_ref, *, compute_dtype):
    # alpha_ref: SMEM (1,1) f32; x_ref: (rb, fb); w_ref/b_ref: (1, fb) in
    # compute_dtype (pre-cast in the wrapper, hoisted out of the body).
    alpha = alpha_ref[0, 0].astype(compute_dtype)
    x = x_ref[...].astype(compute_dtype)
    y = w_ref[...] * jnp.tanh(alpha * x) + b_ref[...]
    o_ref[...] = y.astype(o_ref.dtype)


def _dyt_kernel(alpha_ref, x_ref, o_ref, *, compute_dtype):
    alpha = alpha_ref[0, 0].astype(compute_dtype)
    x = x_ref[...].astype(compute_dtype)
    o_ref[...] = jnp.tanh(alpha * x).astype(o_ref.dtype)


# ------------------------------------------------------------- tile sizing ---

_MIN_ROW_GRID_STEPS = 4  # >= 2 steps per TensorCore on v7x (per-core pipelining)


def _choose_blocks(rows_f, Hf, itemsize, target_tile_bytes):
    """Pick (row_block, feat_block): sublane-aligned rows, 128-multiple lanes,
    sized for the per-chip VMEM budget."""
    sub = max(8, 32 // itemsize)   # sublane multiple: 8 f32, 16 bf16, 32 int8/fp8
    lane = 128

    # Feature block: full Hf if a minimal-height tile fits the budget, else the
    # largest 128-multiple that does (second grid axis over features).
    if Hf <= lane or sub * Hf * itemsize <= target_tile_bytes:
        fb = Hf
    else:
        fb = max(lane, (target_tile_bytes // (sub * itemsize)) // lane * lane)
        fb = min(fb, _round_up(Hf, lane))

    bytes_per_row = max(1, fb * itemsize)
    rb = max(sub, (target_tile_bytes // bytes_per_row) // sub * sub)
    rb = min(rb, _round_up(rows_f, sub))

    # Keep >= _MIN_ROW_GRID_STEPS steps when there is enough work so the single
    # "parallel" axis shards across both v7x TensorCores with double-buffering.
    if _cdiv(Hf, fb) == 1 and rows_f > _MIN_ROW_GRID_STEPS * sub:
        rb = min(rb, _round_up(_cdiv(rows_f, _MIN_ROW_GRID_STEPS), sub))
    return int(rb), int(fb)


# ----------------------------------------------------------- pallas driver ---

def _run_dyt(x2, alpha2, w2, b2, *, compute_dtype, target_tile_bytes,
             vmem_limit_bytes):
    """x2: (rows_f, Hf); w2/b2: (1, Hf) in compute_dtype, or None (no affine)."""
    rows_f, Hf = x2.shape
    itemsize = jnp.dtype(x2.dtype).itemsize
    rb, fb = _choose_blocks(rows_f, Hf, itemsize, target_tile_bytes)
    grid = (_cdiv(rows_f, rb), _cdiv(Hf, fb))

    cparams = pltpu.CompilerParams(
        dimension_semantics=("parallel", "parallel"),
        vmem_limit_bytes=int(vmem_limit_bytes),
    )

    affine = w2 is not None
    if affine:
        kernel = functools.partial(_dyt_affine_kernel, compute_dtype=compute_dtype)
        in_specs = [
            pl.BlockSpec(memory_space=pltpu.MemorySpace.SMEM),   # alpha scalar
            pl.BlockSpec((rb, fb), lambda i, j: (i, j)),         # x tile
            # TODO(synk): if a v7x profile shows exposed input DMA, add
            # pipeline_mode=pl.Buffered(3) on the x BlockSpec.
            pl.BlockSpec((1, fb), lambda i, j: (0, j)),          # weight (resident)
            pl.BlockSpec((1, fb), lambda i, j: (0, j)),          # bias   (resident)
        ]
        args = (alpha2, x2, w2, b2)
    else:
        kernel = functools.partial(_dyt_kernel, compute_dtype=compute_dtype)
        in_specs = [
            pl.BlockSpec(memory_space=pltpu.MemorySpace.SMEM),
            pl.BlockSpec((rb, fb), lambda i, j: (i, j)),
        ]
        args = (alpha2, x2)

    return pl.pallas_call(
        kernel,
        out_shape=jax.ShapeDtypeStruct((rows_f, Hf), x2.dtype),
        grid=grid,
        in_specs=in_specs,
        out_specs=pl.BlockSpec((rb, fb), lambda i, j: (i, j)),
        compiler_params=cparams,
    )(*args)


# ---------------------------------------------------------------- wrapper ----

def dynamic_tanh(x, alpha, weight=None, bias=None, *, bf16_compute=None,
                 target_tile_bytes=None, vmem_limit_bytes=None):
    """DynamicTanh forward.

    x: (..., H) array, feature axis last.
    alpha: scalar parameter (shape () or (1,)).
    weight, bias: optional (H,) parameters (elementwise_affine=True).
    bf16_compute: None = auto (native bf16 math when x is bf16 and the chip has
      a bf16 VPU/EUP, i.e. not v5e); True/False to force. f32 otherwise.
    """
    orig_shape = x.shape
    H = int(orig_shape[-1])
    rows = 1
    for d in orig_shape[:-1]:
        rows *= int(d)

    chip = _chip_kind()
    def_tile, def_vmem = _default_budgets(chip)
    if target_tile_bytes is None:
        target_tile_bytes = def_tile
    if vmem_limit_bytes is None:
        vmem_limit_bytes = def_vmem

    if bf16_compute is None:
        bf16_compute = (x.dtype == jnp.bfloat16) and chip != "v5e"
    compute_dtype = (jnp.bfloat16
                     if (bf16_compute and x.dtype == jnp.bfloat16)
                     else jnp.float32)

    alpha2 = jnp.asarray(alpha, dtype=jnp.float32).reshape(1, 1)

    affine = (weight is not None) or (bias is not None)
    if affine:
        w = (jnp.asarray(weight, compute_dtype) if weight is not None
             else jnp.ones((H,), compute_dtype))
        b = (jnp.asarray(bias, compute_dtype) if bias is not None
             else jnp.zeros((H,), compute_dtype))

    x_flat = x.reshape(rows, H)

    # Fold k consecutive rows into the lane axis so the last dim is a multiple
    # of 128 (lane-dense, unmasked vst).
    k = 128 // math.gcd(H, 128)

    def run_segment(x_rows, k_seg):
        n = x_rows.shape[0]
        Hf = k_seg * H
        x2 = x_rows.reshape(n // k_seg, Hf)
        if affine:
            w2 = jnp.tile(w.reshape(1, H), (1, k_seg))
            b2 = jnp.tile(b.reshape(1, H), (1, k_seg))
        else:
            w2 = b2 = None
        y2 = _run_dyt(x2, alpha2, w2, b2, compute_dtype=compute_dtype,
                      target_tile_bytes=target_tile_bytes,
                      vmem_limit_bytes=vmem_limit_bytes)
        return y2.reshape(n, H)

    bulk_rows = (rows // k) * k
    if k == 1 or bulk_rows == rows:
        out = run_segment(x_flat, k)
    elif bulk_rows == 0:
        out = run_segment(x_flat, 1)          # fewer than k rows total: tiny
    else:
        # Bulk stays lane-dense; <= k-1 leftover rows via a tiny unfolded tail.
        # TODO(synk): a fully fused variant would need manual DMA to avoid the
        # slice/concat copies; only ragged row counts pay this.
        y_bulk = run_segment(x_flat[:bulk_rows], k)
        y_tail = run_segment(x_flat[bulk_rows:], 1)
        out = jnp.concatenate([y_bulk, y_tail], axis=0)

    return out.reshape(orig_shape)


# ------------------------------------------------------------------- main ----

if __name__ == "__main__":
    # DynamicTanh(normalized_shape=32, elementwise_affine=True, alpha_init_value=0.5)
    B, S, H = 2, 8, 32
    key = jax.random.PRNGKey(0)
    x = jax.random.normal(key, (B, S, H), dtype=jnp.float32)

    # Deterministic param init matching the PyTorch __init__.
    alpha = jnp.ones((1,), dtype=jnp.float32) * 0.5
    weight = jnp.ones((H,), dtype=jnp.float32)
    bias = jnp.zeros((H,), dtype=jnp.float32)

    # Affine path (rows divisible by the fold factor).
    y = jax.block_until_ready(dynamic_tanh(x, alpha, weight, bias))
    y_ref = weight * jnp.tanh(alpha[0] * x) + bias
    assert jnp.allclose(y, y_ref, atol=1e-5, rtol=1e-5), "affine mismatch vs reference"

    # No-affine path.
    y2 = jax.block_until_ready(dynamic_tanh(x, alpha))
    assert jnp.allclose(y2, jnp.tanh(alpha[0] * x), atol=1e-5, rtol=1e-5), "no-affine mismatch"

    # Ragged path: rows (=15) not divisible by the fold factor (=4) -> bulk
    # lane-dense kernel + tiny unfolded tail, no whole-array masked fallback.
    x3 = jax.random.normal(jax.random.PRNGKey(1), (3, 5, H), dtype=jnp.float32)
    w3 = jax.random.normal(jax.random.PRNGKey(2), (H,), dtype=jnp.float32)
    b3 = jax.random.normal(jax.random.PRNGKey(3), (H,), dtype=jnp.float32)
    y3 = jax.block_until_ready(dynamic_tanh(x3, alpha, w3, b3))
    y3_ref = w3 * jnp.tanh(alpha[0] * x3) + b3
    assert jnp.allclose(y3, y3_ref, atol=1e-5, rtol=1e-5), "ragged-path mismatch"

    # bf16 input: native bf16 compute on v6e/v7x (auto), f32 compute on v5e.
    x4 = jax.random.normal(jax.random.PRNGKey(4), (B, S, H)).astype(jnp.bfloat16)
    y4 = jax.block_until_ready(dynamic_tanh(x4, alpha, weight, bias))
    y4_ref = jnp.tanh(alpha[0] * x4.astype(jnp.float32))
    assert jnp.allclose(y4.astype(jnp.float32), y4_ref, atol=2e-2, rtol=2e-2), \
        "bf16-path mismatch"

    print("KERNEL_OK")
</pallas_src>

<mosaic_0001>
module attributes {stable_mosaic.version = 11 : i64} {
  func.func @_dyt_affine_kernel(%arg0: i32, %arg1: i32, %arg2: memref<1x1xf32, #tpu.memory_space<smem>>, %arg3: memref<8x128xf32, #tpu.memory_space<vmem>>, %arg4: memref<1x128xf32, #tpu.memory_space<vmem>>, %arg5: memref<1x128xf32, #tpu.memory_space<vmem>>, %arg6: memref<8x128xf32, #tpu.memory_space<vmem>>) attributes {dimension_semantics = [#tpu.dimension_semantics<parallel>, #tpu.dimension_semantics<parallel>], iteration_bounds = array<i64: 1, 1>, scalar_prefetch = 0 : i64, scratch_operands = 0 : i64, tpu.core_type = #tpu.core_type<tc>, window_params = [{transform_indices = @transform_0, window_bounds = array<i64: 1, 1>}, {transform_indices = @transform_1, window_bounds = array<i64: 8, 128>}, {transform_indices = @transform_2, window_bounds = array<i64: 1, 128>}, {transform_indices = @transform_3, window_bounds = array<i64: 1, 128>}, {transform_indices = @transform_4, window_bounds = array<i64: 8, 128>}]} {
    %c0 = arith.constant 0 : index
    %c0_0 = arith.constant 0 : index
    %0 = memref.load %arg2[%c0, %c0_0] : memref<1x1xf32, #tpu.memory_space<smem>>
    %c0_1 = arith.constant 0 : index
    %c0_2 = arith.constant 0 : index
    %1 = vector.load %arg3[%c0_1, %c0_2] : memref<8x128xf32, #tpu.memory_space<vmem>>, vector<8x128xf32>
    %c0_3 = arith.constant 0 : index
    %c0_4 = arith.constant 0 : index
    %2 = vector.load %arg4[%c0_3, %c0_4] : memref<1x128xf32, #tpu.memory_space<vmem>>, vector<1x128xf32>
    %3 = vector.broadcast %0 : f32 to vector<8x128xf32>
    %4 = arith.mulf %3, %1 : vector<8x128xf32>
    %5 = math.tanh %4 : vector<8x128xf32>
    %6 = vector.broadcast %2 : vector<1x128xf32> to vector<8x128xf32>
    %7 = arith.mulf %6, %5 : vector<8x128xf32>
    %c0_5 = arith.constant 0 : index
    %c0_6 = arith.constant 0 : index
    %8 = vector.load %arg5[%c0_5, %c0_6] : memref<1x128xf32, #tpu.memory_space<vmem>>, vector<1x128xf32>
    %9 = vector.broadcast %8 : vector<1x128xf32> to vector<8x128xf32>
    %10 = arith.addf %7, %9 : vector<8x128xf32>
    %c0_7 = arith.constant 0 : index
    %c0_8 = arith.constant 0 : index
    %11 = vector.load %arg6[%c0_7, %c0_8] : memref<8x128xf32, #tpu.memory_space<vmem>>, vector<8x128xf32>
    tpu.vector_store %arg6[%c0_7, %c0_8], %10 {strides = array<i32>} : memref<8x128xf32, #tpu.memory_space<vmem>>, vector<8x128xf32>,
    return
  }
  func.func @transform_0(%arg0: i32, %arg1: i32) -> (i32, i32) {
    %c0_i32 = arith.constant 0 : i32
    %c0_i32_0 = arith.constant 0 : i32
    %c0_i32_1 = arith.constant 0 : i32
    return %c0_i32, %c0_i32_0 : i32, i32
  }
  func.func @transform_1(%arg0: i32, %arg1: i32) -> (i32, i32) {
    %c0_i32 = arith.constant 0 : i32
    return %arg0, %arg1 : i32, i32
  }
  func.func @transform_2(%arg0: i32, %arg1: i32) -> (i32, i32) {
    %c0_i32 = arith.constant 0 : i32
    %c0_i32_0 = arith.constant 0 : i32
    return %c0_i32, %arg1 : i32, i32
  }
  func.func @transform_3(%arg0: i32, %arg1: i32) -> (i32, i32) {
    %c0_i32 = arith.constant 0 : i32
    %c0_i32_0 = arith.constant 0 : i32
    return %c0_i32, %arg1 : i32, i32
  }
  func.func @transform_4(%arg0: i32, %arg1: i32) -> (i32, i32) {
    %c0_i32 = arith.constant 0 : i32
    return %arg0, %arg1 : i32, i32
  }
}

</mosaic_0001>

<bundles_post_ra>
// kernel: tpu_custom_call.1
= control target key start
LH: loop header
LB: loop body
LE: loop exit
PB: predicated region body
PF: predicated region fallthrough
CT: control target
= control target key end

     0   :  { %10 = vsyncpa [#allocation4], 0  ;;  %s174_s0 = inlined_call_operand.<no memory space> [shape: f32[1,1], index: 0, kind: input, shape index: {}]   ;;  %s175_s1 = inlined_call_operand.hbm [shape: f32[4,128], index: 1, kind: input, shape index: {}]   ;;  %s176_s2 = inlined_call_operand.vmem [shape: f32[1,128], index: 2, kind: input, shape index: {}]   ;;  %s177_s3 = inlined_call_operand.vmem [shape: f32[1,128], index: 3, kind: input, shape index: {}]   ;;  %s178_s4 = inlined_call_operand.hbm [shape: f32[4,128], index: 4, kind: output, shape index: {}]  }
   0x1   :  { %11 = vsyncpa [#allocation5], 0 }
   0x2   :  { %17 = vsyncadd [#allocation4], 64  ;;  %s18_s17 = sshll.u32 %s175_s1, 4  ;;  %s130_s18 = smov [#allocation3]   ;;  %s19_s17 = int_to_ptr.hbm [resolvable:$true] %s18_s17 }
   0x3   :  { %s20_s19 = sshll.u32 %s130_s18, 4  ;;  %s131_s20 = smov 64   ;;  %s21_s19 = int_to_ptr.vmem [resolvable:$true] %s20_s19 }
   0x4   :  { %s132_s21 = smov 4  }
   0x5   :  { %26 = dma.hbm_to_vmem [thread:$0]  %s19_s17, 64, %s21_s19, [#allocation4], %s131_s20, %s131_s20, %s132_s21  }
   0x6   :  { %126 = dma.done.wait [#allocation4], 128  }
   0x7   :  { %127 = vsyncadd [#allocation4], 4294967168  ;;  %v38_v0 = vstv %s174_s0  ;;  %v36_v1 = vld [vmem:[#allocation3] sm:$0xff] }
   0x8   :  { %v39_v2 = vmul.f32 %v38_v0, %v36_v1  ;;  %v74_v3 = vld [vmem:[%s176_s2] ss:$0 sm:$0xff] }
   0x9   :  { %v75_v4 = vld [vmem:[%s177_s3] ss:$0 sm:$0xff] }
   0xa   :  { %76 = vtanh.f32 %v39_v2 }
  0x10   :  { %v77_v5 = vpop.eup %76 }
  0x11   :  { %v44_v6 = vmul.f32 %v77_v5, %v74_v3 }
  0x13   :  { %v49_v7 = vadd.f32 %v75_v4, %v44_v6 }
  0x15   :  { %50 = vst [vmem:[#allocation6] sm:$0xff] %v49_v7 }
  0x16   :  { %54 = vsyncadd [#allocation5], 64  ;;  %s57_s0 = sshll.u32 %s178_s4, 4  ;;  %s133_s29 = smov [#allocation6]   ;;  %s58_s0 = int_to_ptr.hbm [resolvable:$true] %s57_s0 }
  0x17   :  { %s55_s30 = sshll.u32 %s133_s29, 4  ;;  %s56_s30 = int_to_ptr.vmem [resolvable:$true] %s55_s30 }
  0x18   :  { %63 = dma.vmem_to_hbm [thread:$0]  %s56_s30, 64, %s58_s0, [#allocation5], %s131_s20, %s131_s20, %s132_s21  }
  0x19   :  { %128 = dma.done.wait [#allocation5], 128  }
  0x1a   :  { %129 = vsyncadd [#allocation5], 4294967168 }
  0x1b   :  { %68 = vsyncpa [#allocation4], 1 }
  0x1c   :  { %69 = vsyncpa [#allocation5], 1 }

</bundles_post_ra>
